<compile_context>
chip_gen: v5e
topology: v5e:2x2
jax: 0.10.0
libtpu: 0.0.40
codegen_flags: <defaults>
</compile_context>

<pallas_src>
import functools

import jax
import jax.numpy as jnp
from jax.experimental import pallas as pl
from jax.experimental.pallas import tpu as pltpu

H_LAYER = 1024  # fixed hidden width of the hyper-network head (PyTorch __init__)

_STEP_OVERHEAD_US = 0.35       # per-grid-step issue/sync overhead
_HBM_BYTES_PER_US = 1.3e6      # ~1.3 TB/s; relative cost model only
_MAX_BATCH_TILE = 256          # rows per batch block
_VMEM_LIMIT_CAP = 48 << 20     # leave headroom on v7x's 64 MiB VMEM


def _round_up(v, m):
    return (v + m - 1) // m * m


def _cdiv(a, b):
    return -(-a // b)


def _tn_lane_cap():
    """Max fused-output tile width (lanes): 2048 on 128-MiB-VMEM chips, else 1024."""
    try:
        vmem = int(pltpu.get_tpu_info().vmem_capacity_bytes)
    except Exception:  # conservative fallback works on every generation
        vmem = 64 << 20
    return 2048 if vmem >= (100 << 20) else 1024


def _plan_n_tiles(n_total, max_tn):
    """Pick the fused-output tile width tn (multiple of 128 lanes).

    Cost model per candidate: grid_n * (weight-tile DMA time + step overhead),
    divided by the TensorCores the 'parallel' axis can occupy (megacore)."""
    n128 = _round_up(max(n_total, 1), 128)
    k_max = max(1, min(max_tn, n128) // 128)
    best = None
    for k in range(1, k_max + 1):
        tn = 128 * k
        gn = _cdiv(n128, tn)
        per_step = (H_LAYER * tn * 4) / _HBM_BYTES_PER_US + _STEP_OVERHEAD_US
        cost = gn * per_step / min(2, gn)
        if best is None or cost < best[0]:
            best = (cost, tn, gn)
    _, tn, gn = best
    return tn, gn, tn * gn


def fuse_head_params(params, output_dim_in, output_dim_out):
    """Build the fused [W1 | b1 | s1] slab ONCE (call at init / param-prep time).

    Weights are stored (in, out); the +1.0 of `s = 1 + s1(x)` is folded into
    the s-bias segment; the fused output axis is zero-padded to the tile plan."""
    Dw = output_dim_in * output_dim_out
    Do = output_dim_out
    n_total = Dw + 2 * Do
    tn, grid_n, n_pad = _plan_n_tiles(n_total, _tn_lane_cap())

    w_cat = jnp.concatenate([params["W1_w"], params["b1_w"], params["s1_w"]], axis=1)
    b_cat = jnp.concatenate([params["W1_b"], params["b1_b"], params["s1_b"] + 1.0])
    w_cat = jnp.pad(w_cat, ((0, 0), (0, n_pad - n_total))).astype(jnp.float32)
    b_cat = jnp.pad(b_cat, (0, n_pad - n_total)).reshape(1, n_pad).astype(jnp.float32)

    return dict(
        w_cat=w_cat, b_cat=b_cat, Dw=Dw, Do=Do, n_total=n_total,
        tn=tn, grid_n=grid_n, n_pad=n_pad,
        output_dim_in=output_dim_in, output_dim_out=output_dim_out,
    )


def _head_kernel(x_ref, w_ref, b_ref, o_ref, *, tn):
    """One fused projection tile.

    x_ref: (tb, 1024)    activation block (resident across the n sweep)
    w_ref: (1024, tn)    fused weight tile (streamed / pipelined)
    b_ref: (1, n_pad)    fused bias row (resident; s-segment already has +1.0)
    o_ref: (tb, tn)      lane-dense fused output tile
    """
    j = pl.program_id(1)
    start = pl.multiple_of(j * tn, 128)
    bias = b_ref[:, pl.ds(start, tn)]                         # (1, tn)
    o_ref[...] = (
        jnp.dot(x_ref[...], w_ref[...], preferred_element_type=jnp.float32) + bias
    ).astype(o_ref.dtype)


def head_forward(x, fused):
    """Pallas-backed Head.forward.  x: (B, 1024) f32; fused: fuse_head_params(...)."""
    B, H = x.shape
    assert H == H_LAYER
    Dw, Do = fused["Dw"], fused["Do"]
    tn, grid_n, n_pad = fused["tn"], fused["grid_n"], fused["n_pad"]
    w_cat, b_cat = fused["w_cat"], fused["b_cat"]

    # Batch tiling: pad tiny batches to the 8-sublane tile; large batches use
    # 256-row blocks on a second "parallel" grid axis (bounds VMEM on v7x).
    b_pad = _round_up(max(B, 1), 8)
    if b_pad > _MAX_BATCH_TILE:
        b_pad = _round_up(B, _MAX_BATCH_TILE)
        tb = _MAX_BATCH_TILE
    else:
        tb = b_pad
    grid_b = b_pad // tb
    x_pad = jnp.pad(x, ((0, b_pad - B), (0, 0)))

    # Weight spec: deepen the pipeline when there are enough steps + VMEM room.
    w_idx = lambda i, j: (0, j)
    n_wbufs = 3 if (grid_n >= 3 and tn <= 1024) else 2
    if n_wbufs > 2:
        try:
            w_spec = pl.BlockSpec((H_LAYER, tn), w_idx,
                                  pipeline_mode=pl.Buffered(n_wbufs))
        except TypeError:
            n_wbufs = 2
            w_spec = pl.BlockSpec((H_LAYER, tn), w_idx)
    else:
        w_spec = pl.BlockSpec((H_LAYER, tn), w_idx)

    # VMEM budget (actual need is small); cap at 48 MiB so it also fits v7x.
    need = 4 * (2 * tb * H_LAYER + n_wbufs * H_LAYER * tn + 2 * n_pad + 2 * tb * tn)
    vmem_bytes = int(min(max(2 * need, 16 << 20), _VMEM_LIMIT_CAP))

    flops = 2 * b_pad * H_LAYER * n_pad
    bytes_accessed = 4 * (grid_b * H_LAYER * n_pad + b_pad * H_LAYER
                          + b_pad * n_pad + n_pad)

    y = pl.pallas_call(
        functools.partial(_head_kernel, tn=tn),
        out_shape=jax.ShapeDtypeStruct((b_pad, n_pad), jnp.float32),
        grid=(grid_b, grid_n),
        in_specs=[
            pl.BlockSpec((tb, H_LAYER), lambda i, j: (i, 0)),   # activations
            w_spec,                                             # fused weights (streamed)
            pl.BlockSpec((1, n_pad), lambda i, j: (0, 0)),      # fused bias (resident)
        ],
        out_specs=pl.BlockSpec((tb, tn), lambda i, j: (i, j)),
        compiler_params=pltpu.CompilerParams(
            dimension_semantics=("parallel", "parallel"),
            vmem_limit_bytes=vmem_bytes,
        ),
        cost_estimate=pl.CostEstimate(
            flops=flops, transcendentals=0, bytes_accessed=bytes_accessed),
    )(x_pad, w_cat, b_cat)

    # Un-pad + split the fused slab; apply the PyTorch .view() reshapes.
    out_out, out_in = fused["output_dim_out"], fused["output_dim_in"]
    w = y[:B, :Dw].reshape(B, out_out, out_in)
    b = y[:B, Dw:Dw + Do].reshape(B, out_out, 1)
    s = y[:B, Dw + Do:Dw + 2 * Do].reshape(B, out_out, 1)
    return w, b, s


def init_head_params(key, output_dim_in, output_dim_out, stddev):
    """Mirror Head.init_layers: uniform(-std, std) weights, zero biases.
    Weights stored as (in, out) = transposed PyTorch layout."""
    Dw = output_dim_in * output_dim_out
    Do = output_dim_out
    k1, k2, k3 = jax.random.split(key, 3)
    return {
        "W1_w": jax.random.uniform(k1, (H_LAYER, Dw), jnp.float32, -stddev, stddev),
        "W1_b": jnp.zeros((Dw,), jnp.float32),
        "b1_w": jax.random.uniform(k2, (H_LAYER, Do), jnp.float32, -stddev, stddev),
        "b1_b": jnp.zeros((Do,), jnp.float32),
        "s1_w": jax.random.uniform(k3, (H_LAYER, Do), jnp.float32, -stddev, stddev),
        "s1_b": jnp.zeros((Do,), jnp.float32),
    }


def _reference(x, params, output_dim_in, output_dim_out):
    B = x.shape[0]

    def lin(w, bias):
        return jnp.dot(x, w, precision=jax.lax.Precision.HIGHEST) + bias

    w = lin(params["W1_w"], params["W1_b"]).reshape(B, output_dim_out, output_dim_in)
    b = lin(params["b1_w"], params["b1_b"]).reshape(B, output_dim_out, 1)
    s = 1.0 + lin(params["s1_w"], params["s1_b"]).reshape(B, output_dim_out, 1)
    return w, b, s


if __name__ == "__main__":
    key = jax.random.PRNGKey(0)
    stddev = 0.05

    # Case 1: tiny head (single grid step).
    # Case 2: non-power-of-two fused width (adaptive tile, grid_n >= 2).
    # Case 3: large batch (exercises the batch-tiling grid axis).
    # Case 4: large head (multi-step weight pipeline).
    cases = [
        dict(batch=2, output_dim_in=4, output_dim_out=8),
        dict(batch=3, output_dim_in=40, output_dim_out=32),
        dict(batch=300, output_dim_in=4, output_dim_out=8),
        dict(batch=4, output_dim_in=126, output_dim_out=64),
    ]

    for i, cfg in enumerate(cases):
        k_params, k_x, key = jax.random.split(jax.random.fold_in(key, i), 3)
        params = init_head_params(k_params, cfg["output_dim_in"],
                                  cfg["output_dim_out"], stddev)
        x = jax.random.normal(k_x, (cfg["batch"], H_LAYER), jnp.float32)

        # Fuse/pad the weights ONCE (init-time cost, not per forward call).
        fused = fuse_head_params(params, cfg["output_dim_in"], cfg["output_dim_out"])

        w, b, s = head_forward(x, fused)
        jax.block_until_ready((w, b, s))

        w_ref, b_ref, s_ref = _reference(x, params, cfg["output_dim_in"],
                                         cfg["output_dim_out"])
        assert w.shape == (cfg["batch"], cfg["output_dim_out"], cfg["output_dim_in"])
        assert b.shape == (cfg["batch"], cfg["output_dim_out"], 1)
        assert s.shape == (cfg["batch"], cfg["output_dim_out"], 1)
        assert jnp.allclose(w, w_ref, atol=1e-4), f"w mismatch (case {i})"
        assert jnp.allclose(b, b_ref, atol=1e-4), f"b mismatch (case {i})"
        assert jnp.allclose(s, s_ref, atol=1e-4), f"s mismatch (case {i})"

    print("KERNEL_OK")
</pallas_src>

<mosaic_0001>
module attributes {stable_mosaic.version = 11 : i64} {
  func.func @_head_kernel(%arg0: i32, %arg1: i32, %arg2: memref<8x1024xf32, #tpu.memory_space<vmem>>, %arg3: memref<1024x128xf32, #tpu.memory_space<vmem>>, %arg4: memref<1x128xf32, #tpu.memory_space<vmem>>, %arg5: memref<8x128xf32, #tpu.memory_space<vmem>>) attributes {dimension_semantics = [#tpu.dimension_semantics<parallel>, #tpu.dimension_semantics<parallel>], iteration_bounds = array<i64: 1, 1>, scalar_prefetch = 0 : i64, scratch_operands = 0 : i64, tpu.core_type = #tpu.core_type<tc>, window_params = [{transform_indices = @transform_0, window_bounds = array<i64: 8, 1024>}, {transform_indices = @transform_1, window_bounds = array<i64: 1024, 128>}, {pipeline_mode = #tpu.pipeline_mode<synchronous>, transform_indices = @transform_2, window_bounds = array<i64: 1, 128>}, {transform_indices = @transform_3, window_bounds = array<i64: 8, 128>}]} {
    %c128_i32 = arith.constant 128 : i32
    %0 = arith.muli %arg1, %c128_i32 : i32
    %1 = tpu.assume_multiple %0, 128 : i32
    %c0 = arith.constant 0 : index
    %2 = arith.index_cast %1 : i32 to index
    %3 = vector.load %arg4[%c0, %2] : memref<1x128xf32, #tpu.memory_space<vmem>>, vector<1x128xf32>
    %c0_0 = arith.constant 0 : index
    %c0_1 = arith.constant 0 : index
    %4 = vector.load %arg2[%c0_0, %c0_1] : memref<8x1024xf32, #tpu.memory_space<vmem>>, vector<8x1024xf32>
    %c0_2 = arith.constant 0 : index
    %c0_3 = arith.constant 0 : index
    %5 = vector.load %arg3[%c0_2, %c0_3] : memref<1024x128xf32, #tpu.memory_space<vmem>>, vector<1024x128xf32>
    %cst = arith.constant dense<0.000000e+00> : vector<8x128xf32>
    %6 = tpu.matmul %4, %5, %cst {dimension_numbers = #tpu.dot_dimension_numbers<[1], [0], [0], [1], [0, 0, 1, 1], [], []>} : vector<8x1024xf32>, vector<1024x128xf32>, vector<8x128xf32> -> vector<8x128xf32>
    %7 = vector.broadcast %3 : vector<1x128xf32> to vector<8x128xf32>
    %8 = arith.addf %6, %7 : vector<8x128xf32>
    %c0_4 = arith.constant 0 : index
    %c0_5 = arith.constant 0 : index
    %9 = vector.load %arg5[%c0_4, %c0_5] : memref<8x128xf32, #tpu.memory_space<vmem>>, vector<8x128xf32>
    tpu.vector_store %arg5[%c0_4, %c0_5], %8 {strides = array<i32>} : memref<8x128xf32, #tpu.memory_space<vmem>>, vector<8x128xf32>,
    return
  }
  func.func @transform_0(%arg0: i32, %arg1: i32) -> (i32, i32) {
    %c0_i32 = arith.constant 0 : i32
    %c0_i32_0 = arith.constant 0 : i32
    return %arg0, %c0_i32 : i32, i32
  }
  func.func @transform_1(%arg0: i32, %arg1: i32) -> (i32, i32) {
    %c0_i32 = arith.constant 0 : i32
    %c0_i32_0 = arith.constant 0 : i32
    return %c0_i32, %arg1 : i32, i32
  }
  func.func @transform_2(%arg0: i32, %arg1: i32) -> (i32, i32) {
    %c0_i32 = arith.constant 0 : i32
    %c0_i32_0 = arith.constant 0 : i32
    %c0_i32_1 = arith.constant 0 : i32
    return %c0_i32, %c0_i32_0 : i32, i32
  }
  func.func @transform_3(%arg0: i32, %arg1: i32) -> (i32, i32) {
    %c0_i32 = arith.constant 0 : i32
    return %arg0, %arg1 : i32, i32
  }
}

</mosaic_0001>

<bundles_post_ra>
// kernel: tpu_custom_call.1
= control target key start
LH: loop header
LB: loop body
LE: loop exit
PB: predicated region body
PF: predicated region fallthrough
CT: control target
= control target key end

     0   :  { %8 = vsyncpa [#allocation3], 0  ;;  %s490_s0 = inlined_call_operand.hbm [shape: f32[8,1024], index: 0, kind: input, shape index: {}]   ;;  %s491_s1 = inlined_call_operand.hbm [shape: f32[1024,128], index: 1, kind: input, shape index: {}]   ;;  %s492_s2 = inlined_call_operand.vmem [shape: f32[1,128], index: 2, kind: input, shape index: {}]   ;;  %s493_s3 = inlined_call_operand.hbm [shape: f32[8,128], index: 3, kind: output, shape index: {}]  }
   0x1   :  { %9 = vsyncpa [#allocation6], 0 }
   0x2   :  { %10 = vsyncpa [#allocation4], 0  ;;  %s16_s14 = sshll.u32 %s490_s0, 4  ;;  %s453_s15 = smov [#allocation2]   ;;  %s17_s14 = int_to_ptr.hbm [resolvable:$true] %s16_s14 }
   0x3   :  { %s18_s16 = sshll.u32 %s453_s15, 4  ;;  %s26_s19 = sshll.u32 %s491_s1, 4  ;;  %s19_s16 = int_to_ptr.vmem [resolvable:$true] %s18_s16  ;;  %s27_s19 = int_to_ptr.hbm [resolvable:$true] %s26_s19 }
   0x4   :  { %21 = dma.hbm_to_vmem [thread:$0]  %s17_s14, 1024, %s19_s16, [#allocation3]  }
   0x5   :  { %s454_s20 = smov [#allocation5]   ;;  %s455_s22 = smov 128  }
   0x6   :  { %s28_s21 = sshll.u32 %s454_s20, 4  ;;  %s456_s23 = smov 8   ;;  %s29_s21 = int_to_ptr.vmem [resolvable:$true] %s28_s21 }
   0x7   :  { %34 = dma.hbm_to_vmem [thread:$0]  %s27_s19, 16384, %s29_s21, [#allocation6], %s455_s22, %s455_s22, %s456_s23  }
   0x8   :  { %447 = dma.done.wait [#allocation3], 1024  }
   0x9   :  { %448 = vsyncadd [#allocation3], 4294966272 }
   0xa   :  { %449 = dma.done.wait [#allocation6], 16384  }
   0xb   :  { %450 = vsyncadd [#allocation6], 4294950912  ;;  %v105_v0 = vld [vmem:[#allocation5 + $0x178] sm:$0xff]  ;;  %v104_v2 = vld [vmem:[#allocation5 + $0x170] sm:$0xff]  ;;  %s457_s24 = smov [#allocation7]   ;;  %s357_s28 = sshll.u32 %s493_s3, 4  ;;  %s358_s28 = int_to_ptr.hbm [resolvable:$true] %s357_s28 }
   0xc   :  { %v73_v1 = vld [vmem:[#allocation5 + $0x78] sm:$0xff]  ;;  %229 = vmatpush.msra.mxu2 %v105_v0  ;;  %v72_v4 = vld [vmem:[#allocation5 + $0x70] sm:$0xff]  ;;  %v103_v6 = vld [vmem:[#allocation5 + $0x168] sm:$0xff]  ;;  %s355_s25 = sshll.u32 %s457_s24, 4  ;;  %s356_s25 = int_to_ptr.vmem [resolvable:$true] %s355_s25 }
   0xd   :  { %189 = vmatpush.msra.mxu0 %v73_v1  ;;  %v121_v3 = vld [vmem:[#allocation5 + $0x1f8] sm:$0xff]  ;;  %v120_v7 = vld [vmem:[#allocation5 + $0x1f0] sm:$0xff]  ;;  %v71_v8 = vld [vmem:[#allocation5 + $0x68] sm:$0xff] }
   0xe   :  { %v89_v5 = vld [vmem:[#allocation5 + $0xf8] sm:$0xff]  ;;  %249 = vmatpush.msra.mxu3 %v121_v3  ;;  %230 = vmatpush.msra.mxu2 %v104_v2  ;;  %v88_v9 = vld [vmem:[#allocation5 + $0xf0] sm:$0xff]  ;;  %v119_v10 = vld [vmem:[#allocation5 + $0x1e8] sm:$0xff] }
   0xf   :  { %209 = vmatpush.msra.mxu1 %v89_v5  ;;  %190 = vmatpush.msra.mxu0 %v72_v4  ;;  %v102_v11 = vld [vmem:[#allocation5 + $0x160] sm:$0xff]  ;;  %v87_v13 = vld [vmem:[#allocation5 + $0xe8] sm:$0xff]  ;;  %v101_v16 = vld [vmem:[#allocation5 + $0x158] sm:$0xff] }
  0x10   :  { %250 = vmatpush.msra.mxu3 %v120_v7  ;;  %v70_v12 = vld [vmem:[#allocation5 + $0x60] sm:$0xff]  ;;  %231 = vmatpush.msra.mxu2 %v103_v6  ;;  %v69_v17 = vld [vmem:[#allocation5 + $0x58] sm:$0xff]  ;;  %v100_v20 = vld [vmem:[#allocation5 + $0x150] sm:$0xff] }
  0x11   :  { %210 = vmatpush.msra.mxu1 %v88_v9  ;;  %191 = vmatpush.msra.mxu0 %v71_v8  ;;  %v118_v14 = vld [vmem:[#allocation5 + $0x1e0] sm:$0xff]  ;;  %v117_v18 = vld [vmem:[#allocation5 + $0x1d8] sm:$0xff]  ;;  %v68_v21 = vld [vmem:[#allocation5 + $0x50] sm:$0xff] }
  0x12   :  { %v86_v15 = vld [vmem:[#allocation5 + $0xe0] sm:$0xff]  ;;  %251 = vmatpush.msra.mxu3 %v119_v10  ;;  %232 = vmatpush.msra.mxu2 %v102_v11  ;;  %v85_v19 = vld [vmem:[#allocation5 + $0xd8] sm:$0xff]  ;;  %v116_v22 = vld [vmem:[#allocation5 + $0x1d0] sm:$0xff] }
  0x13   :  { %211 = vmatpush.msra.mxu1 %v87_v13  ;;  %192 = vmatpush.msra.mxu0 %v70_v12  ;;  %v84_v23 = vld [vmem:[#allocation5 + $0xd0] sm:$0xff]  ;;  %v99_v24 = vld [vmem:[#allocation5 + $0x148] sm:$0xff]  ;;  %v98_v28 = vld [vmem:[#allocation5 + $0x140] sm:$0xff] }
  0x14   :  { %252 = vmatpush.msra.mxu3 %v118_v14  ;;  %233 = vmatpush.msra.mxu2 %v101_v16  ;;  %v67_v25 = vld [vmem:[#allocation5 + $0x48] sm:$0xff]  ;;  %v66_v29 = vld [vmem:[#allocation5 + $0x40] sm:$0xff]  ;;  %v97_v32 = vld [vmem:[#allocation5 + $0x138] sm:$0xff] }
  0x15   :  { %212 = vmatpush.msra.mxu1 %v86_v15  ;;  %193 = vmatpush.msra.mxu0 %v69_v17  ;;  %v115_v26 = vld [vmem:[#allocation5 + $0x1c8] sm:$0xff]  ;;  %v114_v30 = vld [vmem:[#allocation5 + $0x1c0] sm:$0xff]  ;;  %v65_v33 = vld [vmem:[#allocation5 + $0x38] sm:$0xff] }
  0x16   :  { %253 = vmatpush.msra.mxu3 %v117_v18  ;;  %234 = vmatpush.msra.mxu2 %v100_v20  ;;  %v83_v27 = vld [vmem:[#allocation5 + $0xc8] sm:$0xff]  ;;  %v82_v31 = vld [vmem:[#allocation5 + $0xc0] sm:$0xff]  ;;  %v113_v34 = vld [vmem:[#allocation5 + $0x1b8] sm:$0xff] }
  0x17   :  { %213 = vmatpush.msra.mxu1 %v85_v19  ;;  %194 = vmatpush.msra.mxu0 %v68_v21  ;;  %v81_v35 = vld [vmem:[#allocation5 + $0xb8] sm:$0xff]  ;;  %v96_v36 = vld [vmem:[#allocation5 + $0x130] sm:$0xff]  ;;  %v95_v40 = vld [vmem:[#allocation5 + $0x128] sm:$0xff] }
  0x18   :  { %254 = vmatpush.msra.mxu3 %v116_v22  ;;  %235 = vmatpush.msra.mxu2 %v99_v24  ;;  %v64_v37 = vld [vmem:[#allocation5 + $0x30] sm:$0xff]  ;;  %v63_v41 = vld [vmem:[#allocation5 + $0x28] sm:$0xff]  ;;  %v94_v44 = vld [vmem:[#allocation5 + $0x120] sm:$0xff] }
  0x19   :  { %214 = vmatpush.msra.mxu1 %v84_v23  ;;  %195 = vmatpush.msra.mxu0 %v67_v25  ;;  %v112_v38 = vld [vmem:[#allocation5 + $0x1b0] sm:$0xff]  ;;  %v111_v42 = vld [vmem:[#allocation5 + $0x1a8] sm:$0xff]  ;;  %v62_v45 = vld [vmem:[#allocation5 + $0x20] sm:$0xff] }
  0x1a   :  { %255 = vmatpush.msra.mxu3 %v115_v26  ;;  %236 = vmatpush.msra.mxu2 %v98_v28  ;;  %v80_v39 = vld [vmem:[#allocation5 + $0xb0] sm:$0xff]  ;;  %v79_v43 = vld [vmem:[#allocation5 + $0xa8] sm:$0xff]  ;;  %v110_v46 = vld [vmem:[#allocation5 + $0x1a0] sm:$0xff] }
  0x1b   :  { %215 = vmatpush.msra.mxu1 %v83_v27  ;;  %196 = vmatpush.msra.mxu0 %v66_v29  ;;  %v78_v47 = vld [vmem:[#allocation5 + $0xa0] sm:$0xff]  ;;  %v93_v48 = vld [vmem:[#allocation5 + $0x118] sm:$0xff]  ;;  %v92_v52 = vld [vmem:[#allocation5 + $0x110] sm:$0xff] }
  0x1c   :  { %256 = vmatpush.msra.mxu3 %v114_v30  ;;  %237 = vmatpush.msra.mxu2 %v97_v32  ;;  %v61_v49 = vld [vmem:[#allocation5 + $0x18] sm:$0xff]  ;;  %v60_v53 = vld [vmem:[#allocation5 + $0x10] sm:$0xff]  ;;  %v91_v56 = vld [vmem:[#allocation5 + $0x108] sm:$0xff] }
  0x1d   :  { %216 = vmatpush.msra.mxu1 %v82_v31  ;;  %197 = vmatpush.msra.mxu0 %v65_v33  ;;  %v109_v50 = vld [vmem:[#allocation5 + $0x198] sm:$0xff]  ;;  %v108_v54 = vld [vmem:[#allocation5 + $0x190] sm:$0xff]  ;;  %v59_v57 = vld [vmem:[#allocation5 + $0x8] sm:$0xff] }
  0x1e   :  { %257 = vmatpush.msra.mxu3 %v113_v34  ;;  %238 = vmatpush.msra.mxu2 %v96_v36  ;;  %v77_v51 = vld [vmem:[#allocation5 + $0x98] sm:$0xff]  ;;  %v76_v55 = vld [vmem:[#allocation5 + $0x90] sm:$0xff]  ;;  %v107_v58 = vld [vmem:[#allocation5 + $0x188] sm:$0xff] }
  0x1f   :  { %217 = vmatpush.msra.mxu1 %v81_v35  ;;  %198 = vmatpush.msra.mxu0 %v64_v37  ;;  %v75_v59 = vld [vmem:[#allocation5 + $0x88] sm:$0xff]  ;;  %v90_v60 = vld [vmem:[#allocation5 + $0x100] sm:$0xff]  ;;  %v169_v62 = vld [vmem:[#allocation5 + $0x378] sm:$0xff] }
  0x20   :  { %258 = vmatpush.msra.mxu3 %v112_v38  ;;  %239 = vmatpush.msra.mxu2 %v95_v40  ;;  %v58_v61 = vld [vmem:[#allocation5] sm:$0xff]  ;;  %v137_v0 = vld [vmem:[#allocation5 + $0x278] sm:$0xff]  ;;  %v168_v2 = vld [vmem:[#allocation5 + $0x370] sm:$0xff] }
  0x21   :  { %218 = vmatpush.msra.mxu1 %v80_v39  ;;  %199 = vmatpush.msra.mxu0 %v63_v41  ;;  %v106_v63 = vld [vmem:[#allocation5 + $0x180] sm:$0xff]  ;;  %v185_v1 = vld [vmem:[#allocation5 + $0x3f8] sm:$0xff]  ;;  %v136_v4 = vld [vmem:[#allocation5 + $0x270] sm:$0xff] }
  0x22   :  { %259 = vmatpush.msra.mxu3 %v111_v42  ;;  %240 = vmatpush.msra.mxu2 %v94_v44  ;;  %v74_v3 = vld [vmem:[#allocation5 + $0x80] sm:$0xff]  ;;  %v153_v5 = vld [vmem:[#allocation5 + $0x2f8] sm:$0xff]  ;;  %v167_v6 = vld [vmem:[#allocation5 + $0x368] sm:$0xff] }
  0x23   :  { %219 = vmatpush.msra.mxu1 %v79_v43  ;;  %200 = vmatpush.msra.mxu0 %v62_v45  ;;  %v184_v7 = vld [vmem:[#allocation5 + $0x3f0] sm:$0xff]  ;;  %v135_v8 = vld [vmem:[#allocation5 + $0x268] sm:$0xff]  ;;  %v166_v10 = vld [vmem:[#allocation5 + $0x360] sm:$0xff] }
  0x24   :  { %260 = vmatpush.msra.mxu3 %v110_v46  ;;  %241 = vmatpush.msra.mxu2 %v93_v48  ;;  %v152_v9 = vld [vmem:[#allocation5 + $0x2f0] sm:$0xff]  ;;  %v183_v11 = vld [vmem:[#allocation5 + $0x3e8] sm:$0xff]  ;;  %v134_v12 = vld [vmem:[#allocation5 + $0x260] sm:$0xff] }
  0x25   :  { %220 = vmatpush.msra.mxu1 %v78_v47  ;;  %201 = vmatpush.msra.mxu0 %v61_v49  ;;  %v151_v13 = vld [vmem:[#allocation5 + $0x2e8] sm:$0xff]  ;;  %v165_v14 = vld [vmem:[#allocation5 + $0x358] sm:$0xff]  ;;  %v182_v15 = vld [vmem:[#allocation5 + $0x3e0] sm:$0xff] }
  0x26   :  { %261 = vmatpush.msra.mxu3 %v109_v50  ;;  %242 = vmatpush.msra.mxu2 %v92_v52  ;;  %v133_v16 = vld [vmem:[#allocation5 + $0x258] sm:$0xff]  ;;  %v150_v17 = vld [vmem:[#allocation5 + $0x2e0] sm:$0xff]  ;;  %v164_v18 = vld [vmem:[#allocation5 + $0x350] sm:$0xff] }
  0x27   :  { %221 = vmatpush.msra.mxu1 %v77_v51  ;;  %202 = vmatpush.msra.mxu0 %v60_v53  ;;  %v181_v19 = vld [vmem:[#allocation5 + $0x3d8] sm:$0xff]  ;;  %v132_v20 = vld [vmem:[#allocation5 + $0x250] sm:$0xff]  ;;  %v163_v22 = vld [vmem:[#allocation5 + $0x348] sm:$0xff] }
  0x28   :  { %262 = vmatpush.msra.mxu3 %v108_v54  ;;  %243 = vmatpush.msra.mxu2 %v91_v56  ;;  %v149_v21 = vld [vmem:[#allocation5 + $0x2d8] sm:$0xff]  ;;  %v180_v23 = vld [vmem:[#allocation5 + $0x3d0] sm:$0xff]  ;;  %v131_v24 = vld [vmem:[#allocation5 + $0x248] sm:$0xff] }
  0x29   :  { %222 = vmatpush.msra.mxu1 %v76_v55  ;;  %203 = vmatpush.msra.mxu0 %v59_v57  ;;  %v148_v25 = vld [vmem:[#allocation5 + $0x2d0] sm:$0xff]  ;;  %v162_v26 = vld [vmem:[#allocation5 + $0x340] sm:$0xff]  ;;  %v179_v27 = vld [vmem:[#allocation5 + $0x3c8] sm:$0xff] }
  0x2a   :  { %263 = vmatpush.msra.mxu3 %v107_v58  ;;  %244 = vmatpush.msra.mxu2 %v90_v60  ;;  %v130_v28 = vld [vmem:[#allocation5 + $0x240] sm:$0xff]  ;;  %v147_v29 = vld [vmem:[#allocation5 + $0x2c8] sm:$0xff]  ;;  %v161_v30 = vld [vmem:[#allocation5 + $0x338] sm:$0xff] }
  0x2b   :  { %223 = vmatpush.msra.mxu1 %v75_v59  ;;  %204 = vmatpush.msra.mxu0 %v58_v61  ;;  %v178_v31 = vld [vmem:[#allocation5 + $0x3c0] sm:$0xff]  ;;  %v129_v32 = vld [vmem:[#allocation5 + $0x238] sm:$0xff]  ;;  %v160_v34 = vld [vmem:[#allocation5 + $0x330] sm:$0xff] }
  0x2c   :  { %309 = vmatpush.msrb.mxu2 %v169_v62  ;;  %264 = vmatpush.msra.mxu3 %v106_v63  ;;  %v146_v33 = vld [vmem:[#allocation5 + $0x2c0] sm:$0xff]  ;;  %v177_v35 = vld [vmem:[#allocation5 + $0x3b8] sm:$0xff]  ;;  %v128_v36 = vld [vmem:[#allocation5 + $0x230] sm:$0xff] }
  0x2d   :  { %269 = vmatpush.msrb.mxu0 %v137_v0  ;;  %224 = vmatpush.msra.mxu1 %v74_v3  ;;  %v145_v37 = vld [vmem:[#allocation5 + $0x2b8] sm:$0xff]  ;;  %v159_v38 = vld [vmem:[#allocation5 + $0x328] sm:$0xff]  ;;  %v176_v39 = vld [vmem:[#allocation5 + $0x3b0] sm:$0xff] }
  0x2e   :  { %329 = vmatpush.msrb.mxu3 %v185_v1  ;;  %310 = vmatpush.msrb.mxu2 %v168_v2  ;;  %v127_v40 = vld [vmem:[#allocation5 + $0x228] sm:$0xff]  ;;  %v144_v41 = vld [vmem:[#allocation5 + $0x2b0] sm:$0xff]  ;;  %v158_v42 = vld [vmem:[#allocation5 + $0x320] sm:$0xff] }
  0x2f   :  { %270 = vmatpush.msrb.mxu0 %v136_v4  ;;  %289 = vmatpush.msrb.mxu1 %v153_v5  ;;  %v175_v43 = vld [vmem:[#allocation5 + $0x3a8] sm:$0xff]  ;;  %v52_v44 = vld [vmem:[#allocation2 + $0x10] sm:$0xff]  ;;  %v126_v45 = vld [vmem:[#allocation5 + $0x220] sm:$0xff] }
  0x30   :  { %311 = vmatpush.msrb.mxu2 %v167_v6  ;;  %330 = vmatpush.msrb.mxu3 %v184_v7  ;;  %v143_v46 = vld [vmem:[#allocation5 + $0x2a8] sm:$0xff]  ;;  %v157_v47 = vld [vmem:[#allocation5 + $0x318] sm:$0xff]  ;;  %v174_v48 = vld [vmem:[#allocation5 + $0x3a0] sm:$0xff] }
  0x31   :  { %271 = vmatpush.msrb.mxu0 %v135_v8  ;;  %290 = vmatpush.msrb.mxu1 %v152_v9  ;;  %v50_v49 = vld [vmem:[#allocation2] sm:$0xff]  ;;  %v53_v50 = vld [vmem:[#allocation2 + $0x18] sm:$0xff]  ;;  %v156_v53 = vld [vmem:[#allocation5 + $0x310] sm:$0xff] }
  0x32   :  { %312 = vmatpush.msrb.mxu2 %v166_v10  ;;  %331 = vmatpush.msrb.mxu3 %v183_v11  ;;  %v125_v51 = vld [vmem:[#allocation5 + $0x218] sm:$0xff]  ;;  %v142_v52 = vld [vmem:[#allocation5 + $0x2a0] sm:$0xff]  ;;  %v51_v55 = vld [vmem:[#allocation2 + $0x8] sm:$0xff] }
  0x33   :  { %272 = vmatpush.msrb.mxu0 %v134_v12  ;;  %291 = vmatpush.msrb.mxu1 %v151_v13  ;;  %v173_v54 = vld [vmem:[#allocation5 + $0x398] sm:$0xff]  ;;  %v124_v56 = vld [vmem:[#allocation5 + $0x210] sm:$0xff]  ;;  %v155_v58 = vld [vmem:[#allocation5 + $0x308] sm:$0xff] }
  0x34   :  { %313 = vmatpush.msrb.mxu2 %v165_v14  ;;  %332 = vmatpush.msrb.mxu3 %v182_v15  ;;  %v141_v57 = vld [vmem:[#allocation5 + $0x298] sm:$0xff]  ;;  %v172_v59 = vld [vmem:[#allocation5 + $0x390] sm:$0xff]  ;;  %v123_v60 = vld [vmem:[#allocation5 + $0x208] sm:$0xff] }
  0x35   :  { %273 = vmatpush.msrb.mxu0 %v133_v16  ;;  %292 = vmatpush.msrb.mxu1 %v150_v17  ;;  %v140_v61 = vld [vmem:[#allocation5 + $0x290] sm:$0xff]  ;;  %v154_v62 = vld [vmem:[#allocation5 + $0x300] sm:$0xff]  ;;  %v171_v63 = vld [vmem:[#allocation5 + $0x388] sm:$0xff] }
  0x36   :  { %314 = vmatpush.msrb.mxu2 %v164_v18  ;;  %333 = vmatpush.msrb.mxu3 %v181_v19  ;;  %v56_v0 = vld [vmem:[#allocation2 + $0x30] sm:$0xff]  ;;  %v122_v1 = vld [vmem:[#allocation5 + $0x200] sm:$0xff]  ;;  %v139_v2 = vld [vmem:[#allocation5 + $0x288] sm:$0xff] }
  0x37   :  { %274 = vmatpush.msrb.mxu0 %v132_v20  ;;  %293 = vmatpush.msrb.mxu1 %v149_v21  ;;  %v170_v3 = vld [vmem:[#allocation5 + $0x380] sm:$0xff]  ;;  %v57_v5 = vld [vmem:[#allocation2 + $0x38] sm:$0xff]  ;;  %v55_v7 = vld [vmem:[#allocation2 + $0x28] sm:$0xff] }
  0x38   :  { %315 = vmatpush.msrb.mxu2 %v163_v22  ;;  %334 = vmatpush.msrb.mxu3 %v180_v23  ;;  %v54_v4 = vld [vmem:[#allocation2 + $0x20] sm:$0xff] }
  0x39   :  { %275 = vmatpush.msrb.mxu0 %v131_v24  ;;  %294 = vmatpush.msrb.mxu1 %v148_v25  ;;  %v138_v6 = vld [vmem:[#allocation5 + $0x280] sm:$0xff] }
  0x3a   :  { %316 = vmatpush.msrb.mxu2 %v162_v26  ;;  %335 = vmatpush.msrb.mxu3 %v179_v27  ;;  %v374_v8 = vld [vmem:[%s492_s2] ss:$0 sm:$0xff] }
  0x3b   :  { %276 = vmatpush.msrb.mxu0 %v130_v28  ;;  %295 = vmatpush.msrb.mxu1 %v147_v29 }
  0x3c   :  { %317 = vmatpush.msrb.mxu2 %v161_v30  ;;  %336 = vmatpush.msrb.mxu3 %v178_v31 }
  0x3d   :  { %277 = vmatpush.msrb.mxu0 %v129_v32  ;;  %296 = vmatpush.msrb.mxu1 %v146_v33 }
  0x3e   :  { %318 = vmatpush.msrb.mxu2 %v160_v34  ;;  %337 = vmatpush.msrb.mxu3 %v177_v35 }
  0x3f   :  { %278 = vmatpush.msrb.mxu0 %v128_v36  ;;  %297 = vmatpush.msrb.mxu1 %v145_v37 }
  0x40   :  { %319 = vmatpush.msrb.mxu2 %v159_v38  ;;  %338 = vmatpush.msrb.mxu3 %v176_v39 }
  0x41   :  { %279 = vmatpush.msrb.mxu0 %v127_v40  ;;  %298 = vmatpush.msrb.mxu1 %v144_v41 }
  0x42   :  { %320 = vmatpush.msrb.mxu2 %v158_v42  ;;  %339 = vmatpush.msrb.mxu3 %v175_v43 }
  0x43   :  { %245 = vmatmul.f32.vlgmr.msra.gmra.mxu2 %v52_v44  ;;  %280 = vmatpush.msrb.mxu0 %v126_v45 }
  0x44   :  { %299 = vmatpush.msrb.mxu1 %v143_v46  ;;  %321 = vmatpush.msrb.mxu2 %v157_v47 }
  0x45   :  { %340 = vmatpush.msrb.mxu3 %v174_v48  ;;  %205 = vmatmul.f32.vlgmr.msra.gmra.mxu0 %v50_v49 }
  0x46   :  { %265 = vmatmul.f32.vlgmr.msra.gmra.mxu3 %v53_v50  ;;  %281 = vmatpush.msrb.mxu0 %v125_v51 }
  0x47   :  { %300 = vmatpush.msrb.mxu1 %v142_v52  ;;  %322 = vmatpush.msrb.mxu2 %v156_v53 }
  0x48   :  { %341 = vmatpush.msrb.mxu3 %v173_v54  ;;  %225 = vmatmul.f32.vlgmr.msra.gmra.mxu1 %v51_v55 }
  0x49   :  { %282 = vmatpush.msrb.mxu0 %v124_v56  ;;  %301 = vmatpush.msrb.mxu1 %v141_v57 }
  0x4a   :  { %323 = vmatpush.msrb.mxu2 %v155_v58  ;;  %342 = vmatpush.msrb.mxu3 %v172_v59 }
  0x4b   :  { %283 = vmatpush.msrb.mxu0 %v123_v60  ;;  %302 = vmatpush.msrb.mxu1 %v140_v61 }
  0x4c   :  { %324 = vmatpush.msrb.mxu2 %v154_v62  ;;  %343 = vmatpush.msrb.mxu3 %v171_v63 }
  0x4d   :  { %325 = vmatmul.f32.vlgmr.msrb.gmra.mxu2 %v56_v0  ;;  %284 = vmatpush.msrb.mxu0 %v122_v1 }
  0x4e   :  { %303 = vmatpush.msrb.mxu1 %v139_v2  ;;  %344 = vmatpush.msrb.mxu3 %v170_v3 }
  0x4f   :  { %285 = vmatmul.f32.vlgmr.msrb.gmra.mxu0 %v54_v4  ;;  %345 = vmatmul.f32.vlgmr.msrb.gmra.mxu3 %v57_v5 }
  0x50   :  { %304 = vmatpush.msrb.mxu1 %v138_v6 }
  0x51   :  { %305 = vmatmul.f32.vlgmr.msrb.gmra.mxu1 %v55_v7 }
  0xc2   :  { %v206_v9 = vpop.f32.mrf.mxu0 }
  0xc3   :  { %v207_v10 = vadd.f32 %v374_v8, %v206_v9 }
  0xc5   :  { %v226_v11 = vpop.f32.mrf.mxu1 }
  0xc6   :  { %v227_v12 = vadd.f32 %v226_v11, %v207_v10  ;;  %v246_v13 = vpop.f32.mrf.mxu2 }
  0xc8   :  { %v247_v14 = vadd.f32 %v246_v13, %v227_v12 }
  0xc9   :  { %v266_v15 = vpop.f32.mrf.mxu3 }
  0xca   :  { %v267_v16 = vadd.f32 %v266_v15, %v247_v14 }
  0xcc   :  { %v286_v17 = vpop.f32.mrf.mxu0 }
  0xcd   :  { %v287_v18 = vadd.f32 %v286_v17, %v267_v16 }
  0xce   :  { %v306_v19 = vpop.f32.mrf.mxu1 }
  0xcf   :  { %v307_v20 = vadd.f32 %v306_v19, %v287_v18 }
  0xd0   :  { %v326_v21 = vpop.f32.mrf.mxu2 }
  0xd1   :  { %v327_v22 = vadd.f32 %v326_v21, %v307_v20 }
  0xd2   :  { %v346_v23 = vpop.f32.mrf.mxu3 }
  0xd3   :  { %v347_v24 = vadd.f32 %v346_v23, %v327_v22 }
  0xd5   :  { %349 = vst [vmem:[#allocation7] sm:$0xff] %v347_v24 }
  0xd6   :  { %360 = dma.vmem_to_hbm [thread:$0]  %s356_s25, 128, %s358_s28, [#allocation4]  }
  0xd7   :  { %451 = dma.done.wait [#allocation4], 128  }
  0xd8   :  { %452 = vsyncadd [#allocation4], 4294967168 }
  0xd9   :  { %365 = vsyncpa [#allocation3], 1 }
  0xda   :  { %366 = vsyncpa [#allocation6], 1 }
  0xdb   :  { %367 = vsyncpa [#allocation4], 1 }

</bundles_post_ra>
